<compile_context>
chip_gen: v7x
topology: tpu7x:2x2x1
jax: 0.10.0
libtpu: 0.0.40
codegen_flags: <defaults>
</compile_context>

<pallas_src>
import jax
import jax.numpy as jnp
from jax.experimental import pallas as pl
from jax.experimental.pallas import tpu as pltpu


def _lr_kernel(x_ref, w_ref, b_ref, o_ref):
    # x_ref: (block_b, D) VMEM (native dtype), w_ref: (1, D) VMEM (resident),
    # b_ref: (1,) SMEM scalar, o_ref: (block_b, 1) VMEM.
    x = x_ref[...].astype(jnp.float32)                 # in-register upcast (matches x.float())
    w = w_ref[...].astype(jnp.float32)                 # (1, D), broadcast over rows
    s = jnp.sum(x * w, axis=-1, keepdims=True)         # VPU multiply + XLU lane reduce
    o_ref[...] = s + b_ref[0]                          # scalar bias from SMEM, broadcast


def lr_forward(x, weight, bias, *, block_b=None):
    """Forward pass of the `lr` module.

    Args:
      x: (batch, input_elem) array in its native dtype (f32/bf16/...); upcast to f32
         inside the kernel, matching torch's x.float().
      weight: (1, input_elem) -- same layout as torch.nn.Linear.weight.
      bias: (1,) -- same layout as torch.nn.Linear.bias.
      block_b: rows per grid step (defaults to min(batch, 1024)).

    Returns:
      (batch,) float32 predictions (matches rating.reshape(-1)).
    """
    B, D = x.shape
    if block_b is None:
        # Biggest comfortable tile: 2 * block_b * D * itemsize stays tiny vs scoped VMEM.
        block_b = min(B, 1024)
    num_blocks = pl.cdiv(B, block_b)

    bias_f32 = bias.astype(jnp.float32).reshape(1)     # (1,) scalar in SMEM

    bytes_accessed = (
        x.size * x.dtype.itemsize
        + weight.size * weight.dtype.itemsize
        + B * 4
    )

    out = pl.pallas_call(
        _lr_kernel,
        out_shape=jax.ShapeDtypeStruct((B, 1), jnp.float32),
        grid=(num_blocks,),
        in_specs=[
            pl.BlockSpec((block_b, D), lambda i: (i, 0)),            # tiled, pipelined x
            pl.BlockSpec((1, D), lambda i: (0, 0)),                  # weight stays resident
            pl.BlockSpec(memory_space=pltpu.MemorySpace.SMEM),       # bias scalar in SMEM
        ],
        out_specs=pl.BlockSpec((block_b, 1), lambda i: (i, 0)),
        compiler_params=pltpu.CompilerParams(
            dimension_semantics=("parallel",),          # shard batch across TCs on v7x
            vmem_limit_bytes=32 * 1024 * 1024,          # explicit, safe on v5e/v6e/v7x
        ),
        cost_estimate=pl.CostEstimate(
            flops=2 * B * D,
            transcendentals=0,
            bytes_accessed=int(bytes_accessed),
        ),
    )(x, weight, bias_f32)

    return out.reshape(-1)


if __name__ == "__main__":
    key = jax.random.PRNGKey(0)
    k_x, k_w, k_b = jax.random.split(key, 3)

    batch = 16
    input_elem = 32   # model_configs['input_elem']
    block_b = 8       # small demo tile -> grid of 2 steps, exercises the pipeline

    # Deterministic parameter init (uniform like PyTorch Linear reset_parameters bound).
    bound = 1.0 / (float(input_elem) ** 0.5)
    weight = jax.random.uniform(k_w, (1, input_elem), jnp.float32, -bound, bound)
    bias = jax.random.uniform(k_b, (1,), jnp.float32, -bound, bound)

    x = jax.random.normal(k_x, (batch, input_elem), jnp.float32)

    pred = lr_forward(x, weight, bias, block_b=block_b)
    jax.block_until_ready(pred)

    # Reference check against plain JAX (same math as torch.nn.Linear).
    ref = (x.astype(jnp.float32) @ weight.T + bias).reshape(-1)
    assert pred.shape == (batch,)
    assert jnp.allclose(pred, ref, atol=1e-5, rtol=1e-5)

    print("KERNEL_OK")
</pallas_src>

<mosaic_0001>
module attributes {stable_mosaic.version = 11 : i64} {
  func.func @_lr_kernel(%arg0: i32, %arg1: memref<8x32xf32, #tpu.memory_space<vmem>>, %arg2: memref<1x32xf32, #tpu.memory_space<vmem>>, %arg3: memref<1xf32, #tpu.memory_space<smem>>, %arg4: memref<8x1xf32, #tpu.memory_space<vmem>>) attributes {dimension_semantics = [#tpu.dimension_semantics<parallel>], iteration_bounds = array<i64: 2>, scalar_prefetch = 0 : i64, scratch_operands = 0 : i64, tpu.core_type = #tpu.core_type<tc>, window_params = [{transform_indices = @transform_0, window_bounds = array<i64: 8, 32>}, {pipeline_mode = #tpu.pipeline_mode<synchronous>, transform_indices = @transform_1, window_bounds = array<i64: 1, 32>}, {transform_indices = @transform_2, window_bounds = array<i64: 1>}, {transform_indices = @transform_3, window_bounds = array<i64: 8, 1>}]} {
    %c0 = arith.constant 0 : index
    %c0_0 = arith.constant 0 : index
    %0 = vector.load %arg1[%c0, %c0_0] : memref<8x32xf32, #tpu.memory_space<vmem>>, vector<8x32xf32>
    %c0_1 = arith.constant 0 : index
    %c0_2 = arith.constant 0 : index
    %1 = vector.load %arg2[%c0_1, %c0_2] : memref<1x32xf32, #tpu.memory_space<vmem>>, vector<1x32xf32>
    %2 = vector.broadcast %1 : vector<1x32xf32> to vector<8x32xf32>
    %3 = arith.mulf %0, %2 : vector<8x32xf32>
    %cst = arith.constant dense<0.000000e+00> : vector<8xf32>
    %4 = vector.multi_reduction <add>, %3, %cst [1] : vector<8x32xf32> to vector<8xf32>
    %5 = vector.shape_cast %4 : vector<8xf32> to vector<8x1xf32>
    %c0_3 = arith.constant 0 : index
    %6 = memref.load %arg3[%c0_3] : memref<1xf32, #tpu.memory_space<smem>>
    %7 = vector.broadcast %6 : f32 to vector<8x1xf32>
    %8 = arith.addf %5, %7 : vector<8x1xf32>
    %c0_4 = arith.constant 0 : index
    %c0_5 = arith.constant 0 : index
    %9 = vector.load %arg4[%c0_4, %c0_5] : memref<8x1xf32, #tpu.memory_space<vmem>>, vector<8x1xf32>
    tpu.vector_store %arg4[%c0_4, %c0_5], %8 {strides = array<i32>} : memref<8x1xf32, #tpu.memory_space<vmem>>, vector<8x1xf32>,
    return
  }
  func.func @transform_0(%arg0: i32) -> (i32, i32) {
    %c0_i32 = arith.constant 0 : i32
    %c0_i32_0 = arith.constant 0 : i32
    return %arg0, %c0_i32 : i32, i32
  }
  func.func @transform_1(%arg0: i32) -> (i32, i32) {
    %c0_i32 = arith.constant 0 : i32
    %c0_i32_0 = arith.constant 0 : i32
    %c0_i32_1 = arith.constant 0 : i32
    return %c0_i32, %c0_i32_0 : i32, i32
  }
  func.func @transform_2(%arg0: i32) -> i32 {
    %c0_i32 = arith.constant 0 : i32
    %c0_i32_0 = arith.constant 0 : i32
    return %c0_i32 : i32
  }
  func.func @transform_3(%arg0: i32) -> (i32, i32) {
    %c0_i32 = arith.constant 0 : i32
    %c0_i32_0 = arith.constant 0 : i32
    return %arg0, %c0_i32 : i32, i32
  }
}

</mosaic_0001>

<bundles_post_ra>
// kernel: tpu_custom_call.1
= control target key start
LH: loop header
LB: loop body
LE: loop exit
PB: predicated region body
PF: predicated region fallthrough
CT: control target
= control target key end

     0   :  { %s520_s0 = inlined_call_operand.hbm [shape: f32[16,32], index: 0, kind: input, shape index: {}]   ;;  %s521_s1 = inlined_call_operand.vmem [shape: f32[1,32], index: 1, kind: input, shape index: {}]   ;;  %s522_s2 = inlined_call_operand.<no memory space> [shape: f32[1], index: 2, kind: input, shape index: {}]   ;;  %s523_s3 = inlined_call_operand.vmem [shape: f32[16,1], index: 3, kind: output, shape index: {}]  }
   0x1   :  { %8 = sst [smem:[#allocation2]] %s522_s2 }
   0x2   :  { %9 = vsyncpa [#allocation4], 0 }
   0x3   :  { %11 = vsyncpa [#allocation4 + $0x1], 0  ;;  %s410_s14 = smov 0   ;;  %s412_s15 = smov 0  }
   0x4   :  { %s414_s16 = smov 0   ;;  %s416_s17 = smov 0  }
   0x5 LB: > { %s429_s2 = sadd.s32 4294967295, %s384_s17   ;;  %s432_s18 = sadd.s32 1, %s384_s17   ;;  %s384_s17 = sphi %s416_s17, %s531_s17   ;;  %s380_s16 = sphi %s414_s16, %s530_s16   ;;  %s376_s15 = sphi %s412_s15, %s529_s15   ;;  %s372_s14 = sphi %s410_s14, %s528_s14  }
   0x6   : > { %s21_s19 = ssub.s32 %s384_s17, %s432_s18  ;;  %s24_s20 = sadd.s32 1, %s380_s16 }
   0x7   : > { %p22_p0 = scmp.eq.s32.totalorder %s21_s19, 0  ;;  %p31_p1 = scmp.ne.s32.totalorder %s380_s16, %s376_s15 }
   0x8   : > { %p32_p2 = scmp.eq.s32.totalorder %s384_s17, 0  ;;  %p37_p3 = scmp.ne.s32.totalorder %s376_s15, %s372_s14 }
   0x9   : > { %s442_s21 = scalar_select %p22_p0, %s380_s16, %s24_s20  }
   0xa   : > { %p33_p4 = por %p32_p2, %p31_p1  ;;  %p38_p5 = scmp.eq.s32.totalorder %s429_s2, 0 }
   0xb   : > { %p287_p6 = scmp.lt.s32.totalorder %s384_s17, 2  ;;  %s135_s23 = sand.u32 1, %s380_s16  }
   0xc   : > { %p446_p7 = por %p38_p5, %p37_p3  ;;  %s273_s24 = sshll.u32 %s135_s23, 3 }
   0xd   : > { %s274_s25 = sshll.u32 %s384_s17, 7  ;;  %s139_s29 = scalar_lea.vmem [#allocation3], %s273_s24 }
   0xe   : > { %s455_s28 = scalar_lea.hbm %s520_s0, %s274_s25  ;;  %s146_s30 = sshll.u32 %s139_s29, 4  ;;  %s457_s30 = int_to_ptr.vmem [resolvable:$true] %s146_s30 }
   0xf   : > { %p459_p8 = pnand %p287_p6, %p33_p4  ;;  %s136_s5 = scalar_lea.sflag [#allocation4], %s135_s23 }
  0x10   : > { %s320_s6 = scalar_lea.hbm %s455_s28, 128  ;;  %s325_s9 = scalar_lea.hbm %s520_s0, 256 }
  0x11   : > { %p321_p11 = scmp.ne.s32.totalorder %s455_s28, %s320_s6  ;;  %p322_p12 = pneg %p459_p8 }
  0x12   : > { %p326_p1 = scmp.lt.u32.totalorder %s455_s28, %s520_s0  ;;  %p327_p2 = scmp.lt.u32.totalorder %s325_s9, %s320_s6 }
  0x13   : > { %p323_p13 = pnand %p322_p12, %p321_p11  ;;  %p329_p4 = scmp.lt.u32.totalorder %s320_s6, %s455_s28 }
  0x14   : > { %p328_p3 = por %p327_p2, %p326_p1 }
  0x15   : > { %p324_p0 = pneg %p323_p13 }
  0x16   : > { %p330_p5 = por %p329_p4, %p328_p3 }
  0x18   : > { %p331_p6 = pnand %p330_p5, %p324_p0 }
  0x1a   : > { %334 = shalt.err (!%p331_p6)
}
  0x1b   : > { %s335_s12 = scalar_lea.vmem %s457_s30, 128  ;;  %s386_s13 = smov [#allocation3]  }
  0x1c   : > { %p336_p11 = scmp.ne.s32.totalorder %s457_s30, %s335_s12  ;;  %s340_s14 = sshll.u32 %s386_s13, 4  ;;  %s341_s14 = int_to_ptr.vmem [resolvable:$false] %s340_s14 }
  0x1d   : > { %s342_s19 = scalar_lea.vmem %s341_s14, 256  ;;  %p343_p10 = scmp.lt.s32.totalorder %s457_s30, %s341_s14 }
  0x1e   : > { %p338_p13 = pnand %p336_p11, %p322_p12  ;;  %p344_p1 = scmp.lt.s32.totalorder %s342_s19, %s335_s12 }
  0x20   : > { %p339_p9 = pneg %p338_p13  ;;  %p345_p2 = por %p344_p1, %p343_p10 }
  0x22   : > { %p346_p3 = pnand %p345_p2, %p339_p9 }
  0x24   : > { %349 = shalt.err (!%p346_p3)
}
  0x25   : > { %286 = dma.hbm_to_vmem [thread:$0]  (!%p459_p8), %s455_s28, 128, %s457_s30, %s136_s5  }
  0x26   : > { %p526_p0 = scmp.lt.s32.totalorder %s384_s17, 3  ;;  %p527_p4 = scmp.ge.s32.totalorder %s384_s17, 1 }
  0x28   : > { %p152_p12 = pnand %p527_p4, %p526_p0 }
  0x29   : > { %s157_s20 = sand.u32 (!%p152_p12), 1, %s376_s15  }
  0x2a   : > { %155 = sbr.rel (%p152_p12) target bundleno = 200 (0xc8), region = 32  ;;  %s276_s23 = sshll.u32 (!%p152_p12), %s157_s20, 3 }
  0x2b   : > { %s158_s24 = scalar_lea.sflag (!%p152_p12), [#allocation4], %s157_s20  ;;  %s161_s25 = scalar_lea.vmem (!%p152_p12), [#allocation3], %s276_s23 }
  0x31   : > { %367 = dma.done.wait (%p446_p7), %s158_s24, 128  }
  0x32   : > { %369 = vsyncadd (%p446_p7), %s158_s24, 4294967168  ;;  %v187_v0 = vld [vmem:[%s161_s25] sm:$0xff]  ;;  %vm196_vm0 = vcmask 261120   ;;  %p183_p8 = scmp.lt.s32.totalorder %s429_s2, 1  ;;  %s200_s17 = sld [smem:[#allocation2]]  ;;  %vm203_vm1 = vcmask 7168  }
  0x33   : > { %v278_v1 = vld [vmem:[%s521_s1] ss:$0 sm:$0xff] }
  0x34   : > { %v195_v2 = vmul.f32 %v278_v1, %v187_v0  ;;  %s533_s2 = smov (!%p183_p8, %s429_s2), 1 }
  0x35   : > { %s277_s28 = sshll.u32 %s533_s2, 3 }
  0x36   : > { %v197_v3 = vsel %vm196_vm0, %v195_v2, 0.0  ;;  %s186_s22 = scalar_lea.vmem %s523_s3, %s277_s28 }
  0x37   : > { %198 = vadd.xlane.f32.xlu0 %v197_v3 }
  0x38   : > { %v201_v4 = vstv %s200_s17 }
  0xc4   : > { %v199_v5 = vpop.xlane.xlu0 %198 }
  0xc5   : > { %v202_v6 = vadd.f32 %v201_v4, %v199_v5 }
  0xc7   : > { %204 = vst.msk [vmem:[%s186_s22] sm:$0xff] %vm203_vm1, %v202_v6 }
  0xc8 PF: > { %p14_p7 = scmp.ge.s32.totalorder %s432_s18, 4   ;;  %s528_s14 = smov %s376_s15 }
  0xc9   : > { %s529_s15 = smov %s380_s16  ;;  %s530_s16 = smov %s442_s21 }
  0xca   : > { %s531_s17 = smov %s432_s18  ;;  %16 = sbr.rel (!%p14_p7) target bundleno = 5 (0x5), region = 72 }
  0xd1   :  { %224 = vsyncpa [#allocation4], 1 }
  0xd2   :  { %226 = vsyncpa [#allocation4 + $0x1], 1 }

</bundles_post_ra>
